<compile_context>
chip_gen: v7x
topology: tpu7x:2x2x1
jax: 0.10.0
libtpu: 0.0.40
codegen_flags: <defaults>
</compile_context>

<pallas_src>
import jax
import jax.numpy as jnp
from jax.experimental import pallas as pl
from jax.experimental.pallas import tpu as pltpu


def _focus_conv_kernel(p0_ref, p1_ref, p2_ref, p3_ref, w_ref, shift_ref, o_ref):
    # p*_ref  : (1, C, tm)       space-to-depth patches (channels x spatial tile)
    # w_ref   : (4, C_out, C)    BN-scale-folded 1x1 conv weight, one slab per patch
    # shift_ref: (C_out, 1)      folded BN shift = beta - mean * gamma / sqrt(var+eps)
    # o_ref   : (1, C_out, tm)
    acc = jnp.dot(w_ref[0], p0_ref[0], preferred_element_type=jnp.float32)
    acc = acc + jnp.dot(w_ref[1], p1_ref[0], preferred_element_type=jnp.float32)
    acc = acc + jnp.dot(w_ref[2], p2_ref[0], preferred_element_type=jnp.float32)
    acc = acc + jnp.dot(w_ref[3], p3_ref[0], preferred_element_type=jnp.float32)
    y = acc + shift_ref[...]                       # (C_out, tm) + (C_out, 1)
    o_ref[0] = (y * jax.nn.sigmoid(y)).astype(o_ref.dtype)   # SiLU


def focus_conv_pallas(p0, p1, p2, p3, w_stack, shift, *, max_tm=2048,
                      out_dtype=jnp.float32):
    """p*: (B, C, L), w_stack: (4, C_out, C), shift: (C_out, 1) -> (B, C_out, L)."""
    B, C, L = p0.shape
    _, N, _ = w_stack.shape

    # Largest lane-dense tile: full spatial extent if it fits, otherwise a
    # 128-aligned tile with a cdiv grid (partial last block masked by Pallas).
    tm = L if L <= max_tm else max_tm
    nl = pl.cdiv(L, tm)

    p_spec = pl.BlockSpec((1, C, tm), lambda b, l: (b, 0, l))

    out = pl.pallas_call(
        _focus_conv_kernel,
        out_shape=jax.ShapeDtypeStruct((B, N, L), out_dtype),
        grid_spec=pltpu.PrefetchScalarGridSpec(
            num_scalar_prefetch=0,
            grid=(B, nl),
            in_specs=[
                p_spec, p_spec, p_spec, p_spec,
                pl.BlockSpec((4, N, C), lambda b, l: (0, 0, 0)),
                pl.BlockSpec((N, 1), lambda b, l: (0, 0)),
            ],
            out_specs=pl.BlockSpec((1, N, tm), lambda b, l: (b, 0, l)),
        ),
        compiler_params=pltpu.CompilerParams(
            dimension_semantics=("parallel", "parallel"),
        ),
    )(p0, p1, p2, p3, w_stack, shift)
    return out


def focus_block_forward(x_nchw, conv_w, bn_gamma, bn_beta, bn_mean, bn_var,
                        eps=1e-5):
    """FocusBlock.forward with kernel_size=1, stride=1 (module defaults), BN eval.

    x_nchw : (B, C, H, W) float32
    conv_w : (C_out, 4*C) 1x1 conv weight (bias=False)
    returns: (B, C_out, H//2, W//2)
    """
    B, C, H, W = x_nchw.shape
    C_out = conv_w.shape[0]
    H2, W2 = H // 2, W // 2
    L = H2 * W2

    # Space-to-depth patches, same order as the PyTorch concat; each (B, C, L).
    p0 = x_nchw[..., ::2, ::2].reshape(B, C, L)
    p1 = x_nchw[..., 1::2, ::2].reshape(B, C, L)
    p2 = x_nchw[..., ::2, 1::2].reshape(B, C, L)
    p3 = x_nchw[..., 1::2, 1::2].reshape(B, C, L)

    # Fold BN (eval) scale into the weight; keep only the shift for the kernel.
    scale = bn_gamma / jnp.sqrt(bn_var + eps)                 # (C_out,)
    shift = (bn_beta - bn_mean * scale).reshape(C_out, 1)
    w = conv_w * scale[:, None]                               # (C_out, 4C)
    w_stack = jnp.stack(
        [w[:, 0 * C:1 * C], w[:, 1 * C:2 * C],
         w[:, 2 * C:3 * C], w[:, 3 * C:4 * C]], axis=0)       # (4, C_out, C)

    out = focus_conv_pallas(p0, p1, p2, p3, w_stack, shift)   # (B, C_out, L)
    return out.reshape(B, C_out, H2, W2)                      # already NCHW


def _reference_forward(x_nchw, conv_w, bn_gamma, bn_beta, bn_mean, bn_var,
                       eps=1e-5):
    """Pure-JAX reference (no Pallas) for a correctness check."""
    p0 = x_nchw[..., ::2, ::2]
    p1 = x_nchw[..., 1::2, ::2]
    p2 = x_nchw[..., ::2, 1::2]
    p3 = x_nchw[..., 1::2, 1::2]
    xc = jnp.concatenate([p0, p1, p2, p3], axis=1)            # (B, 4C, H/2, W/2)
    y = jnp.einsum("bkhw,ok->bohw", xc, conv_w)               # 1x1 conv, no bias
    scale = bn_gamma / jnp.sqrt(bn_var + eps)
    y = y * scale[None, :, None, None] \
        + (bn_beta - bn_mean * scale)[None, :, None, None]
    return y * jax.nn.sigmoid(y)


if __name__ == "__main__":
    key = jax.random.PRNGKey(0)
    k_x, k_w, k_g, k_b, k_m, k_v = jax.random.split(key, 6)

    B, C, H, W = 2, 4, 16, 16
    C_out = 32
    K = 4 * C

    x = jax.random.normal(k_x, (B, C, H, W), dtype=jnp.float32)

    # Deterministic parameter init (conv has no bias; BN in eval mode).
    conv_w = jax.random.normal(k_w, (C_out, K), dtype=jnp.float32) * (1.0 / K) ** 0.5
    bn_gamma = 1.0 + 0.1 * jax.random.normal(k_g, (C_out,), dtype=jnp.float32)
    bn_beta = 0.1 * jax.random.normal(k_b, (C_out,), dtype=jnp.float32)
    bn_mean = 0.1 * jax.random.normal(k_m, (C_out,), dtype=jnp.float32)
    bn_var = jnp.abs(1.0 + 0.1 * jax.random.normal(k_v, (C_out,), dtype=jnp.float32))

    fwd = jax.jit(focus_block_forward)
    out = fwd(x, conv_w, bn_gamma, bn_beta, bn_mean, bn_var)
    out = jax.block_until_ready(out)

    ref = _reference_forward(x, conv_w, bn_gamma, bn_beta, bn_mean, bn_var)
    assert out.shape == (B, C_out, H // 2, W // 2), out.shape
    assert jnp.allclose(out, ref, atol=1e-4, rtol=1e-4), \
        float(jnp.max(jnp.abs(out - ref)))

    print("KERNEL_OK")
</pallas_src>

<mosaic_0001>
module attributes {stable_mosaic.version = 11 : i64} {
  func.func @_focus_conv_kernel(%arg0: i32, %arg1: i32, %arg2: memref<1x4x64xf32, #tpu.memory_space<vmem>>, %arg3: memref<1x4x64xf32, #tpu.memory_space<vmem>>, %arg4: memref<1x4x64xf32, #tpu.memory_space<vmem>>, %arg5: memref<1x4x64xf32, #tpu.memory_space<vmem>>, %arg6: memref<4x32x4xf32, #tpu.memory_space<vmem>>, %arg7: memref<32x1xf32, #tpu.memory_space<vmem>>, %arg8: memref<1x32x64xf32, #tpu.memory_space<vmem>>) attributes {dimension_semantics = [#tpu.dimension_semantics<parallel>, #tpu.dimension_semantics<parallel>], iteration_bounds = array<i64: 2, 1>, scalar_prefetch = 0 : i64, scratch_operands = 0 : i64, tpu.core_type = #tpu.core_type<tc>, window_params = [{transform_indices = @transform_0, window_bounds = array<i64: 1, 4, 64>}, {transform_indices = @transform_1, window_bounds = array<i64: 1, 4, 64>}, {transform_indices = @transform_2, window_bounds = array<i64: 1, 4, 64>}, {transform_indices = @transform_3, window_bounds = array<i64: 1, 4, 64>}, {pipeline_mode = #tpu.pipeline_mode<synchronous>, transform_indices = @transform_4, window_bounds = array<i64: 4, 32, 4>}, {pipeline_mode = #tpu.pipeline_mode<synchronous>, transform_indices = @transform_5, window_bounds = array<i64: 32, 1>}, {transform_indices = @transform_6, window_bounds = array<i64: 1, 32, 64>}]} {
    %c0 = arith.constant 0 : index
    %c0_0 = arith.constant 0 : index
    %c0_1 = arith.constant 0 : index
    %0 = vector.load %arg6[%c0, %c0_0, %c0_1] : memref<4x32x4xf32, #tpu.memory_space<vmem>>, vector<1x32x4xf32>
    %1 = vector.shape_cast %0 : vector<1x32x4xf32> to vector<32x4xf32>
    %c0_2 = arith.constant 0 : index
    %c0_3 = arith.constant 0 : index
    %c0_4 = arith.constant 0 : index
    %2 = vector.load %arg2[%c0_2, %c0_3, %c0_4] : memref<1x4x64xf32, #tpu.memory_space<vmem>>, vector<1x4x64xf32>
    %3 = vector.shape_cast %2 : vector<1x4x64xf32> to vector<4x64xf32>
    %cst = arith.constant dense<0.000000e+00> : vector<32x64xf32>
    %4 = tpu.matmul %1, %3, %cst {dimension_numbers = #tpu.dot_dimension_numbers<[1], [0], [0], [1], [0, 0, 1, 1], [], []>} : vector<32x4xf32>, vector<4x64xf32>, vector<32x64xf32> -> vector<32x64xf32>
    %c1 = arith.constant 1 : index
    %c0_5 = arith.constant 0 : index
    %c0_6 = arith.constant 0 : index
    %5 = vector.load %arg6[%c1, %c0_5, %c0_6] : memref<4x32x4xf32, #tpu.memory_space<vmem>>, vector<1x32x4xf32>
    %6 = vector.shape_cast %5 : vector<1x32x4xf32> to vector<32x4xf32>
    %c0_7 = arith.constant 0 : index
    %c0_8 = arith.constant 0 : index
    %c0_9 = arith.constant 0 : index
    %7 = vector.load %arg3[%c0_7, %c0_8, %c0_9] : memref<1x4x64xf32, #tpu.memory_space<vmem>>, vector<1x4x64xf32>
    %8 = vector.shape_cast %7 : vector<1x4x64xf32> to vector<4x64xf32>
    %cst_10 = arith.constant dense<0.000000e+00> : vector<32x64xf32>
    %9 = tpu.matmul %6, %8, %cst_10 {dimension_numbers = #tpu.dot_dimension_numbers<[1], [0], [0], [1], [0, 0, 1, 1], [], []>} : vector<32x4xf32>, vector<4x64xf32>, vector<32x64xf32> -> vector<32x64xf32>
    %10 = arith.addf %4, %9 : vector<32x64xf32>
    %c2 = arith.constant 2 : index
    %c0_11 = arith.constant 0 : index
    %c0_12 = arith.constant 0 : index
    %11 = vector.load %arg6[%c2, %c0_11, %c0_12] : memref<4x32x4xf32, #tpu.memory_space<vmem>>, vector<1x32x4xf32>
    %12 = vector.shape_cast %11 : vector<1x32x4xf32> to vector<32x4xf32>
    %c0_13 = arith.constant 0 : index
    %c0_14 = arith.constant 0 : index
    %c0_15 = arith.constant 0 : index
    %13 = vector.load %arg4[%c0_13, %c0_14, %c0_15] : memref<1x4x64xf32, #tpu.memory_space<vmem>>, vector<1x4x64xf32>
    %14 = vector.shape_cast %13 : vector<1x4x64xf32> to vector<4x64xf32>
    %cst_16 = arith.constant dense<0.000000e+00> : vector<32x64xf32>
    %15 = tpu.matmul %12, %14, %cst_16 {dimension_numbers = #tpu.dot_dimension_numbers<[1], [0], [0], [1], [0, 0, 1, 1], [], []>} : vector<32x4xf32>, vector<4x64xf32>, vector<32x64xf32> -> vector<32x64xf32>
    %16 = arith.addf %10, %15 : vector<32x64xf32>
    %c3 = arith.constant 3 : index
    %c0_17 = arith.constant 0 : index
    %c0_18 = arith.constant 0 : index
    %17 = vector.load %arg6[%c3, %c0_17, %c0_18] : memref<4x32x4xf32, #tpu.memory_space<vmem>>, vector<1x32x4xf32>
    %18 = vector.shape_cast %17 : vector<1x32x4xf32> to vector<32x4xf32>
    %c0_19 = arith.constant 0 : index
    %c0_20 = arith.constant 0 : index
    %c0_21 = arith.constant 0 : index
    %19 = vector.load %arg5[%c0_19, %c0_20, %c0_21] : memref<1x4x64xf32, #tpu.memory_space<vmem>>, vector<1x4x64xf32>
    %20 = vector.shape_cast %19 : vector<1x4x64xf32> to vector<4x64xf32>
    %cst_22 = arith.constant dense<0.000000e+00> : vector<32x64xf32>
    %21 = tpu.matmul %18, %20, %cst_22 {dimension_numbers = #tpu.dot_dimension_numbers<[1], [0], [0], [1], [0, 0, 1, 1], [], []>} : vector<32x4xf32>, vector<4x64xf32>, vector<32x64xf32> -> vector<32x64xf32>
    %22 = arith.addf %16, %21 : vector<32x64xf32>
    %c0_23 = arith.constant 0 : index
    %c0_24 = arith.constant 0 : index
    %23 = vector.load %arg7[%c0_23, %c0_24] : memref<32x1xf32, #tpu.memory_space<vmem>>, vector<32x1xf32>
    %24 = vector.broadcast %23 : vector<32x1xf32> to vector<32x64xf32>
    %25 = arith.addf %22, %24 : vector<32x64xf32>
    %26 = arith.negf %25 : vector<32x64xf32>
    %27 = math.exp %26 : vector<32x64xf32>
    %cst_25 = arith.constant 1.000000e+00 : f32
    %28 = vector.broadcast %cst_25 : f32 to vector<32x64xf32>
    %29 = arith.addf %28, %27 : vector<32x64xf32>
    %30 = arith.divf %28, %29 : vector<32x64xf32>
    %31 = arith.mulf %25, %30 : vector<32x64xf32>
    %c0_26 = arith.constant 0 : index
    %c0_27 = arith.constant 0 : index
    %c0_28 = arith.constant 0 : index
    %32 = vector.load %arg8[%c0_26, %c0_27, %c0_28] : memref<1x32x64xf32, #tpu.memory_space<vmem>>, vector<1x32x64xf32>
    %33 = vector.shape_cast %32 : vector<1x32x64xf32> to vector<32x64xf32>
    %34 = vector.shape_cast %31 : vector<32x64xf32> to vector<1x32x64xf32>
    tpu.vector_store %arg8[%c0_26, %c0_27, %c0_28], %34 {strides = array<i32>} : memref<1x32x64xf32, #tpu.memory_space<vmem>>, vector<1x32x64xf32>,
    return
  }
  func.func @transform_0(%arg0: i32, %arg1: i32) -> (i32, i32, i32) {
    %c0_i32 = arith.constant 0 : i32
    %c0_i32_0 = arith.constant 0 : i32
    return %arg0, %c0_i32, %arg1 : i32, i32, i32
  }
  func.func @transform_1(%arg0: i32, %arg1: i32) -> (i32, i32, i32) {
    %c0_i32 = arith.constant 0 : i32
    %c0_i32_0 = arith.constant 0 : i32
    return %arg0, %c0_i32, %arg1 : i32, i32, i32
  }
  func.func @transform_2(%arg0: i32, %arg1: i32) -> (i32, i32, i32) {
    %c0_i32 = arith.constant 0 : i32
    %c0_i32_0 = arith.constant 0 : i32
    return %arg0, %c0_i32, %arg1 : i32, i32, i32
  }
  func.func @transform_3(%arg0: i32, %arg1: i32) -> (i32, i32, i32) {
    %c0_i32 = arith.constant 0 : i32
    %c0_i32_0 = arith.constant 0 : i32
    return %arg0, %c0_i32, %arg1 : i32, i32, i32
  }
  func.func @transform_4(%arg0: i32, %arg1: i32) -> (i32, i32, i32) {
    %c0_i32 = arith.constant 0 : i32
    %c0_i32_0 = arith.constant 0 : i32
    %c0_i32_1 = arith.constant 0 : i32
    %c0_i32_2 = arith.constant 0 : i32
    return %c0_i32, %c0_i32_0, %c0_i32_1 : i32, i32, i32
  }
  func.func @transform_5(%arg0: i32, %arg1: i32) -> (i32, i32) {
    %c0_i32 = arith.constant 0 : i32
    %c0_i32_0 = arith.constant 0 : i32
    %c0_i32_1 = arith.constant 0 : i32
    return %c0_i32, %c0_i32_0 : i32, i32
  }
  func.func @transform_6(%arg0: i32, %arg1: i32) -> (i32, i32, i32) {
    %c0_i32 = arith.constant 0 : i32
    %c0_i32_0 = arith.constant 0 : i32
    return %arg0, %c0_i32, %arg1 : i32, i32, i32
  }
}

</mosaic_0001>

<bundles_post_ra>
// kernel: focus_block_forward.1
= control target key start
LH: loop header
LB: loop body
LE: loop exit
PB: predicated region body
PF: predicated region fallthrough
CT: control target
= control target key end

     0   :  { %s1200_s21 = smov 0   ;;  %s1202_s22 = smov 0   ;;  %s1330_s0 = inlined_call_operand.vmem [shape: f32[2,4,64], index: 0, kind: input, shape index: {}]   ;;  %s1331_s1 = inlined_call_operand.vmem [shape: f32[2,4,64], index: 1, kind: input, shape index: {}]   ;;  %s1332_s2 = inlined_call_operand.vmem [shape: f32[2,4,64], index: 2, kind: input, shape index: {}]   ;;  %s1333_s3 = inlined_call_operand.vmem [shape: f32[2,4,64], index: 3, kind: input, shape index: {}]   ;;  %s1334_s4 = inlined_call_operand.vmem [shape: f32[4,32,4], index: 4, kind: input, shape index: {}]   ;;  %s1335_s5 = inlined_call_operand.vmem [shape: f32[32,1], index: 5, kind: input, shape index: {}]   ;;  %s1336_s6 = inlined_call_operand.vmem [shape: f32[2,32,64], index: 6, kind: output, shape index: {}]  }
   0x1   :  { %s1204_s23 = smov 0  }
   0x2 LB: > { %s28_s24 = sadd.s32 1, %s1158_s22  ;;  %p987_p0 = scmp.ge.s32.totalorder %s1162_s23, 1  ;;  %s1162_s23 = sphi %s1204_s23, %s16_s23   ;;  %s1158_s22 = sphi %s1202_s22, %s1338_s22   ;;  %s1154_s21 = sphi %s1200_s21, %s1337_s21  }
   0x3   : > { %p30_p1 = scmp.ge.s32.totalorder %s28_s24, 2  ;;  %p272_p2 = scmp.lt.s32.totalorder %s1162_s23, 3 }
   0x5   : > { %s1340_s24 = smov (%p30_p1, %s28_s24), 0  ;;  %p273_p3 = pnand %p987_p0, %p272_p2 }
   0x6   : > { %p328_p4 = scmp.lt.s32.totalorder (!%p273_p3), %s1154_s21, 1  ;;  %v994_v0 = vld [vmem:[%s1334_s4 + $0x20] sm:$0xff] (!%p273_p3)  ;;  %vm375_vm0 = vcmask (!%p273_p3), 31744   ;;  %v1164_v2 = vmov (!%p273_p3), 0   ;;  %vm388_vm1 = vcmask (!%p273_p3), 1043456   ;;  %v799_v4 = vld [vmem:[%s1335_s5 + $0x10] sm:$0xff] (!%p273_p3) }
   0x7   : > { %276 = sbr.rel (%p273_p3) target bundleno = 279 (0x117), region = 44  ;;  %v1008_v1 = vld [vmem:[%s1334_s4 + $0x40] sm:$0xff] (!%p273_p3)  ;;  %1055 = vmatprep.mubr.msk.f32.mxu1 (!%p273_p3), %vm375_vm0, %v994_v0  ;;  %1122 = vset.pattern.permute.xlu0 (!%p273_p3), %v1164_v2  ;;  %v995_v6 = vld [vmem:[%s1334_s4 + $0x28] sm:$0xff] (!%p273_p3)  ;;  %v996_v11 = vld [vmem:[%s1334_s4 + $0x30] sm:$0xff] (!%p273_p3)  ;;  %vm853_vm2 = vcmask (!%p273_p3), 523264  }
   0x8   : > { %1071 = vmatprep.mubr.msk.f32.mxu0 (!%p273_p3), %vm375_vm0, %v1008_v1  ;;  %1123 = vset.pattern.permute.xlu1 (!%p273_p3), %v1164_v2  ;;  %v797_v3 = vld [vmem:[%s1335_s5] sm:$0xff] (!%p273_p3)  ;;  %v1009_v9 = vld [vmem:[%s1334_s4 + $0x48] sm:$0xff] (!%p273_p3)  ;;  %v1010_v12 = vld [vmem:[%s1334_s4 + $0x50] sm:$0xff] (!%p273_p3) }
   0x9   : > { %803 = vperm.xlu0 (!%p273_p3), %1122, %v797_v3   ;;  %813 = vperm.xlu1 (!%p273_p3), %1123, %v799_v4   ;;  %v997_v13 = vld [vmem:[%s1334_s4 + $0x38] sm:$0xff] (!%p273_p3)  ;;  %v364_v15 = vld [vmem:[%s1334_s4] sm:$0xff] (!%p273_p3)  ;;  %v798_v17 = vld [vmem:[%s1335_s5 + $0x8] sm:$0xff] (!%p273_p3) }
   0xa   : > { %v1011_v14 = vld [vmem:[%s1334_s4 + $0x58] sm:$0xff] (!%p273_p3)  ;;  %v1017_v16 = vld [vmem:[%s1334_s4 + $0x60] sm:$0xff] (!%p273_p3)  ;;  %v365_v19 = vld [vmem:[%s1334_s4 + $0x8] sm:$0xff] (!%p273_p3) }
   0xb   : > { %v800_v18 = vld [vmem:[%s1335_s5 + $0x18] sm:$0xff] (!%p273_p3)  ;;  %v1018_v20 = vld [vmem:[%s1334_s4 + $0x68] sm:$0xff] (!%p273_p3)  ;;  %v366_v21 = vld [vmem:[%s1334_s4 + $0x10] sm:$0xff] (!%p273_p3) }
   0xc   : > { %v1019_v22 = vld [vmem:[%s1334_s4 + $0x70] sm:$0xff] (!%p273_p3)  ;;  %v367_v23 = vld [vmem:[%s1334_s4 + $0x18] sm:$0xff] (!%p273_p3) }
   0xd   : > { %808 = vperm.xlu0 (!%p273_p3), %1122, %v798_v17   ;;  %818 = vperm.xlu1 (!%p273_p3), %1123, %v800_v18   ;;  %v1020_v24 = vld [vmem:[%s1334_s4 + $0x78] sm:$0xff] (!%p273_p3) }
   0xe   : > { %s1342_s21 = smov (!%p328_p4, %s1154_s21), 1 }
   0xf   : > { %s988_s29 = sshll.u32 %s1342_s21, 2  ;;  %s1032_s14 = sshll.u32 %s1342_s21, 5 }
  0x10   : > { %s341_s8 = scalar_lea.vmem %s1331_s1, %s988_s29  ;;  %s348_s15 = scalar_lea.vmem %s1332_s2, %s988_s29 }
  0x11   : > { %v374_v5 = vld [vmem:[%s341_s8] sm:$0xf]  ;;  %s334_s20 = scalar_lea.vmem %s1330_s0, %s988_s29  ;;  %s355_s30 = scalar_lea.vmem %s1333_s3, %s988_s29 }
  0x12   : > { %1053 = vmatprep.subr.msk.mxu1 %vm388_vm1, %v374_v5  ;;  %v582_v7 = vld [vmem:[%s348_s15] sm:$0xf]  ;;  %s363_s17 = scalar_lea.vmem %s1336_s6, %s1032_s14 }
  0x13   : > { %v368_v8 = vld [vmem:[%s334_s20] sm:$0xf]  ;;  %1069 = vmatprep.subr.msk.mxu0 %vm388_vm1, %v582_v7  ;;  %1054 = vmatpush3.msk.msra.mxu1 %vm388_vm1, %v374_v5 }
  0x14   : > { %v692_v10 = vld [vmem:[%s355_s30] sm:$0xf]  ;;  %1070 = vmatpush3.msk.msra.mxu0 %vm388_vm1, %v582_v7  ;;  %1056 = vmatmul.mubr.msk.f32.vlgmr.msra.gmra.mrb[0].mxu1 %vm375_vm0, %v995_v6 }
  0x15   : > { %1061 = vmatprep.subr.msk.mxu1 %vm388_vm1, %v368_v8  ;;  %1072 = vmatmul.mubr.msk.f32.vlgmr.msra.gmra.mrb[0].mxu0 %vm375_vm0, %v1009_v9 }
  0x16   : > { %1077 = vmatprep.subr.msk.mxu0 %vm388_vm1, %v692_v10  ;;  %1062 = vmatpush3.msk.msra.mxu1 %vm388_vm1, %v368_v8 }
  0x17   : > { %1078 = vmatpush3.msk.msra.mxu0 %vm388_vm1, %v692_v10  ;;  %1058 = vmatprep.mubr.msk.f32.mxu1 %vm375_vm0, %v996_v11 }
  0x18   : > { %1074 = vmatprep.mubr.msk.f32.mxu0 %vm375_vm0, %v1010_v12  ;;  %1059 = vmatmul.mubr.msk.f32.gmra.mrb[2].mxu1 %vm375_vm0, %v997_v13 }
  0x19   : > { %1075 = vmatmul.mubr.msk.f32.gmra.mrb[2].mxu0 %vm375_vm0, %v1011_v14  ;;  %1063 = vmatprep.mubr.msk.f32.mxu1 %vm375_vm0, %v364_v15 }
  0x1a   : > { %1079 = vmatprep.mubr.msk.f32.mxu0 %vm375_vm0, %v1017_v16 }
  0x1c   : > { %1064 = vmatmul.mubr.msk.f32.vlgmr.msra.gmra.mrb[0].mxu1 %vm375_vm0, %v365_v19 }
  0x1d   : > { %1080 = vmatmul.mubr.msk.f32.vlgmr.msra.gmra.mrb[0].mxu0 %vm375_vm0, %v1018_v20  ;;  %1066 = vmatprep.mubr.msk.f32.mxu1 %vm375_vm0, %v366_v21 }
  0x1e   : > { %1082 = vmatprep.mubr.msk.f32.mxu0 %vm375_vm0, %v1019_v22 }
  0x20   : > { %1067 = vmatmul.mubr.msk.f32.gmra.mrb[2].mxu1 %vm375_vm0, %v367_v23 }
  0x21   : > { %1083 = vmatmul.mubr.msk.f32.gmra.mrb[2].mxu0 %vm375_vm0, %v1020_v24 }
  0x88   : > { %v804_v25 = vpop.permute.xlu0 %803  ;;  %v814_v26 = vpop.permute.xlu1 %813 }
  0x8c   : > { %v809_v28 = vpop.permute.xlu0 %808  ;;  %v819_v43 = vpop.permute.xlu1 %818 }
  0xef   : > { %v1065_v27 = vpop.f32.mrb[0].mxu1 }
  0xf0   : > { %v1081_v29 = vpop.f32.mrb[0].mxu0  ;;  %v558_v30 = vpop.f32.mrb[1].mxu1 }
  0xf1   : > { %v1085_v31 = vadd.f32 %v1081_v29, %v1065_v27  ;;  %v774_v32 = vpop.f32.mrb[1].mxu0 }
  0xf2   : > { %v1086_v33 = vadd.f32 %v774_v32, %v558_v30 }
  0xf3   : > { %v822_v34 = vadd.f32 %v1085_v31, %v809_v28  ;;  %v1068_v35 = vpop.f32.mrb[2].mxu1 }
  0xf4   : > { %v821_v36 = vadd.f32 %v1086_v33, %v804_v25  ;;  %v1084_v37 = vpop.f32.mrb[2].mxu0  ;;  %v568_v38 = vpop.f32.mrb[3].mxu1 }
  0xf5   : > { %v1027_v39 = vmul.f32 -1.442695, %v822_v34  ;;  %v1087_v40 = vadd.f32 %v1084_v37, %v1068_v35  ;;  %v784_v41 = vpop.f32.mrb[3].mxu0 }
  0xf6   : > { %v1026_v42 = vmul.f32 -1.442695, %v821_v36  ;;  %v1088_v44 = vadd.f32 %v784_v41, %v568_v38 }
  0xf7   : > { %1124 = vpow2.f32 %v1027_v39  ;;  %v824_v45 = vadd.f32 %v1087_v40, %v819_v43 }
  0xf8   : > { %1126 = vpow2.f32 %v1026_v42  ;;  %v823_v46 = vadd.f32 %v1088_v44, %v814_v26 }
  0xf9   : > { %v1029_v47 = vmul.f32 -1.442695, %v824_v45 }
  0xfa   : > { %v1028_v48 = vmul.f32 -1.442695, %v823_v46 }
  0xfb   : > { %1128 = vpow2.f32 %v1029_v47 }
  0xfc   : > { %1130 = vpow2.f32 %v1028_v48 }
 0x101   : > { %v1125_v49 = vpop.eup %1124 }
 0x102   : > { %v1127_v50 = vpop.eup %1126  ;;  %v838_v51 = vadd.f32 1.0, %v1125_v49 }
 0x103   : > { %v837_v52 = vadd.f32 1.0, %v1127_v50 }
 0x104   : > { %1132 = vrcp.f32 %v838_v51 }
 0x105   : > { %v1129_v53 = vpop.eup %1128  ;;  %1134 = vrcp.f32 %v837_v52 }
 0x106   : > { %v1131_v54 = vpop.eup %1130  ;;  %v840_v55 = vadd.f32 1.0, %v1129_v53 }
 0x107   : > { %v839_v56 = vadd.f32 1.0, %v1131_v54 }
 0x108   : > { %1136 = vrcp.f32 %v840_v55 }
 0x109   : > { %1138 = vrcp.f32 %v839_v56 }
 0x10e   : > { %v1133_v57 = vpop.eup %1132 }
 0x10f   : > { %v1135_v58 = vpop.eup %1134  ;;  %v850_v59 = vmul.f32 %v1133_v57, %v822_v34 }
 0x110   : > { %v849_v60 = vmul.f32 %v1135_v58, %v821_v36 }
 0x111   : > { %855 = vst.msk [vmem:[%s363_s17 + $0x8] sm:$0xff] %vm853_vm2, %v850_v59 }
 0x112   : > { %v1137_v61 = vpop.eup %1136  ;;  %854 = vst.msk [vmem:[%s363_s17] sm:$0xff] %vm853_vm2, %v849_v60 }
 0x113   : > { %v1139_v62 = vpop.eup %1138  ;;  %v852_v63 = vmul.f32 %v1137_v61, %v824_v45 }
 0x114   : > { %v851_v0 = vmul.f32 %v1139_v62, %v823_v46 }
 0x115   : > { %857 = vst.msk [vmem:[%s363_s17 + $0x18] sm:$0xff] %vm853_vm2, %v852_v63 }
 0x116   : > { %856 = vst.msk [vmem:[%s363_s17 + $0x10] sm:$0xff] %vm853_vm2, %v851_v0 }
 0x117 PF: > { %s16_s23 = sadd.s32 1, %s1162_s23   ;;  %s1337_s21 = smov %s1158_s22 }
 0x118   : > { %p13_p5 = scmp.ge.s32.totalorder %s16_s23, 4   ;;  %s1338_s22 = smov %s1340_s24 }
 0x11a   :  { %15 = sbr.rel (!%p13_p5) target bundleno = 2 (0x2), region = 86 }

</bundles_post_ra>
